<compile_context>
chip_gen: v6e
topology: v6e:2x2x1
jax: 0.10.0
libtpu: 0.0.40
codegen_flags: <defaults>
</compile_context>

<pallas_src>
import functools
import math

import jax
import jax.numpy as jnp
from jax import lax
from jax.experimental import pallas as pl
from jax.experimental.pallas import tpu as pltpu

LANE = 128
TILE_BYTES = 4 * 1024 * 1024      # per-input bytes per grid step (x2 inputs x2 buffers ≈ 16 MiB)
VMEM_LIMIT = 48 * 1024 * 1024     # <= v7x 64 MiB physical; well above v5e's 16 MiB scoped default


def _min_rows(dtype) -> int:
    # Sublane-packing minimum for the second-minor block dim: 8 (f32) / 16 (bf16/f16) / 32 (int8).
    return max(8, 32 // jnp.dtype(dtype).itemsize)


def _l2_kernel(yp_ref, yt_ref, num_ref, den_ref, num_acc, den_acc,
               *, n, tile_n, tiles_per_split, need_mask):
    s = pl.program_id(0)           # N-split axis (parallel; feeds both TCs when batch is tiny)
    j = pl.program_id(2)           # N reduction axis (last, "arbitrary")
    nj = pl.num_programs(2)

    @pl.when(j == 0)
    def _():
        num_acc[...] = jnp.zeros_like(num_acc)
        den_acc[...] = jnp.zeros_like(den_acc)

    yp = yp_ref[...].astype(jnp.float32)   # only upcast: in-register, per tile
    yt = yt_ref[...].astype(jnp.float32)

    if need_mask:
        # Zero lanes past the true N (boundary-tile garbage and clamp-duplicated tiles).
        g = s * tiles_per_split + j                      # un-clamped global tile index
        col = g * tile_n + lax.broadcasted_iota(jnp.int32, yp.shape, 1)
        valid = col < n
        yp = jnp.where(valid, yp, 0.0)
        yt = jnp.where(valid, yt, 0.0)

    d = yp - yt
    # Per-row partial sums of squares, carried in VMEM across the N axis.
    # TODO(synk): per-lane (TB,128) partials would move the cross-lane reduce to the
    # epilogue, but the kernel is HBM-bound so the XLU reduce is hidden; keep it simple.
    num_acc[...] += jnp.sum(d * d, axis=-1, keepdims=True)
    den_acc[...] += jnp.sum(yt * yt, axis=-1, keepdims=True)

    @pl.when(j == nj - 1)
    def _():
        num_ref[...] = num_acc[...]
        den_ref[...] = den_acc[...]


def l2_loss(y_predict: jax.Array, y_true: jax.Array) -> jax.Array:
    """mean_i ( ||y_pred_i - y_true_i||_F / ||y_true_i||_F ) over the batch."""
    assert y_predict.shape == y_true.shape
    b = y_predict.shape[0]
    n = math.prod(y_predict.shape[1:])

    # Stream native dtypes; the only upcast to f32 happens inside the kernel.
    yp2 = y_predict.reshape(b, n)
    yt2 = y_true.reshape(b, n)

    # Rows per batch tile: sublane minimum for the wider packing of the two dtypes,
    # never more rows than the batch itself (full-dim blocks are always legal).
    tb_full = max(_min_rows(yp2.dtype), _min_rows(yt2.dtype))
    tb = min(tb_full, b)

    # Lanes per N tile: ~4 MiB of each input per step, multiple of 128 lanes.
    itemsize = max(jnp.dtype(yp2.dtype).itemsize, jnp.dtype(yt2.dtype).itemsize)
    tile_n_max = max(LANE, (TILE_BYTES // (tb * itemsize)) // LANE * LANE)
    tile_n = pl.cdiv(n, LANE) * LANE if n <= tile_n_max else tile_n_max

    n_tiles = pl.cdiv(n, tile_n)
    batch_tiles = pl.cdiv(b, tb)

    # v7x has 2 TensorCores: with a single batch tile, split the N reduction into two
    # independent halves so both cores stream HBM; partials are recombined below.
    nsplit = 2 if (batch_tiles == 1 and n_tiles >= 2) else 1
    tiles_per_split = pl.cdiv(n_tiles, nsplit)

    need_mask = (n % tile_n != 0) or (nsplit * tiles_per_split != n_tiles)

    if nsplit * tiles_per_split == n_tiles:
        in_index = lambda s, i, j: (i, s * tiles_per_split + j)
    else:
        last = n_tiles - 1  # clamp duplicated tail tiles; their lanes are fully masked
        in_index = lambda s, i, j: (i, jnp.minimum(s * tiles_per_split + j, last))

    kernel = functools.partial(_l2_kernel, n=n, tile_n=tile_n,
                               tiles_per_split=tiles_per_split, need_mask=need_mask)

    out_rows = batch_tiles * tb
    num_p, den_p = pl.pallas_call(
        kernel,
        out_shape=(jax.ShapeDtypeStruct((nsplit, out_rows, 1), jnp.float32),
                   jax.ShapeDtypeStruct((nsplit, out_rows, 1), jnp.float32)),
        grid_spec=pltpu.PrefetchScalarGridSpec(
            num_scalar_prefetch=0,
            grid=(nsplit, batch_tiles, tiles_per_split),
            in_specs=[
                pl.BlockSpec((tb, tile_n), in_index),
                pl.BlockSpec((tb, tile_n), in_index),
            ],
            out_specs=[
                pl.BlockSpec((None, tb, 1), lambda s, i, j: (s, i, 0)),
                pl.BlockSpec((None, tb, 1), lambda s, i, j: (s, i, 0)),
            ],
            scratch_shapes=[
                pltpu.VMEM((tb, 1), jnp.float32),
                pltpu.VMEM((tb, 1), jnp.float32),
            ],
        ),
        compiler_params=pltpu.CompilerParams(
            dimension_semantics=("parallel", "parallel", "arbitrary"),
            vmem_limit_bytes=VMEM_LIMIT,
        ),
    )(yp2, yt2)

    # Combine split partials, drop batch-boundary garbage rows, finish on (B,) scalars.
    num = jnp.sum(num_p[:, :b, 0], axis=0)
    den = jnp.sum(den_p[:, :b, 0], axis=0)
    # NOTE: like the PyTorch module, an all-zero y_true sample yields inf/nan.
    return jnp.mean(jnp.sqrt(num) / jnp.sqrt(den))


def _ref_loss(yp, yt):
    bb = yp.shape[0]
    d = (yp.astype(jnp.float32) - yt.astype(jnp.float32)).reshape(bb, -1)
    num = jnp.sqrt(jnp.sum(d * d, axis=1))
    den = jnp.sqrt(jnp.sum(yt.astype(jnp.float32).reshape(bb, -1) ** 2, axis=1))
    return jnp.mean(num / den)


if __name__ == "__main__":
    key = jax.random.PRNGKey(0)
    k1, k2, k3, k4 = jax.random.split(key, 4)

    # Case 1: canonical small NCHW f32.
    yt1 = jax.random.normal(k1, (2, 4, 16, 16), dtype=jnp.float32)
    yp1 = yt1 + 0.1 * jax.random.normal(k2, (2, 4, 16, 16), dtype=jnp.float32)
    out1 = l2_loss(yp1, yt1)
    jax.block_until_ready(out1)
    assert jnp.allclose(out1, _ref_loss(yp1, yt1), rtol=1e-5, atol=1e-6), (out1, _ref_loss(yp1, yt1))

    # Case 2: N not a multiple of 128 and batch not a multiple of 8 -> exercises the
    # in-kernel remainder mask and batch boundary blocks (no jnp.pad anywhere).
    yt2 = jax.random.normal(k3, (3, 5, 7, 11), dtype=jnp.float32)
    yp2 = yt2 + 0.05 * jax.random.normal(k4, (3, 5, 7, 11), dtype=jnp.float32)
    out2 = l2_loss(yp2, yt2)
    jax.block_until_ready(out2)
    assert jnp.allclose(out2, _ref_loss(yp2, yt2), rtol=1e-5, atol=1e-6), (out2, _ref_loss(yp2, yt2))

    # Case 3: bf16 inputs streamed natively (upcast happens only inside the kernel).
    yt3 = yt1.astype(jnp.bfloat16)
    yp3 = yp1.astype(jnp.bfloat16)
    out3 = l2_loss(yp3, yt3)
    jax.block_until_ready(out3)
    assert jnp.allclose(out3, _ref_loss(yp3, yt3), rtol=1e-4, atol=1e-5), (out3, _ref_loss(yp3, yt3))

    print("KERNEL_OK")
</pallas_src>

<mosaic_0001>
module attributes {stable_mosaic.version = 11 : i64} {
  func.func @_l2_kernel(%arg0: i32, %arg1: i32, %arg2: i32, %arg3: memref<2x1024xf32, #tpu.memory_space<vmem>>, %arg4: memref<2x1024xf32, #tpu.memory_space<vmem>>, %arg5: memref<1x2x1xf32, #tpu.memory_space<vmem>>, %arg6: memref<1x2x1xf32, #tpu.memory_space<vmem>>, %arg7: memref<2x1xf32, #tpu.memory_space<vmem>>, %arg8: memref<2x1xf32, #tpu.memory_space<vmem>>) attributes {dimension_semantics = [#tpu.dimension_semantics<parallel>, #tpu.dimension_semantics<parallel>, #tpu.dimension_semantics<arbitrary>], iteration_bounds = array<i64: 1, 1, 1>, scalar_prefetch = 0 : i64, scratch_operands = 2 : i64, tpu.core_type = #tpu.core_type<tc>, window_params = [{transform_indices = @transform_0, window_bounds = array<i64: 2, 1024>}, {transform_indices = @transform_1, window_bounds = array<i64: 2, 1024>}, {transform_indices = @transform_2, window_bounds = array<i64: 1, 2, 1>}, {transform_indices = @transform_3, window_bounds = array<i64: 1, 2, 1>}]} {
    %c0_i32 = arith.constant 0 : i32
    %0 = arith.cmpi eq, %arg2, %c0_i32 : i32
    %1 = arith.extui %0 : i1 to i32
    %c0_i32_0 = arith.constant 0 : i32
    %2 = arith.cmpi ne, %1, %c0_i32_0 : i32
    scf.if %2 {
      %cst_15 = arith.constant 0.000000e+00 : f32
      %21 = vector.broadcast %cst_15 : f32 to vector<2x1xf32>
      %c0_16 = arith.constant 0 : index
      %c0_17 = arith.constant 0 : index
      %22 = vector.load %arg7[%c0_16, %c0_17] : memref<2x1xf32, #tpu.memory_space<vmem>>, vector<2x1xf32>
      tpu.vector_store %arg7[%c0_16, %c0_17], %21 {strides = array<i32>} : memref<2x1xf32, #tpu.memory_space<vmem>>, vector<2x1xf32>,
      %cst_18 = arith.constant 0.000000e+00 : f32
      %23 = vector.broadcast %cst_18 : f32 to vector<2x1xf32>
      %c0_19 = arith.constant 0 : index
      %c0_20 = arith.constant 0 : index
      %24 = vector.load %arg8[%c0_19, %c0_20] : memref<2x1xf32, #tpu.memory_space<vmem>>, vector<2x1xf32>
      tpu.vector_store %arg8[%c0_19, %c0_20], %23 {strides = array<i32>} : memref<2x1xf32, #tpu.memory_space<vmem>>, vector<2x1xf32>,
    } else {
    }
    %c0 = arith.constant 0 : index
    %c0_1 = arith.constant 0 : index
    %3 = vector.load %arg3[%c0, %c0_1] : memref<2x1024xf32, #tpu.memory_space<vmem>>, vector<2x1024xf32>
    %c0_2 = arith.constant 0 : index
    %c0_3 = arith.constant 0 : index
    %4 = vector.load %arg4[%c0_2, %c0_3] : memref<2x1024xf32, #tpu.memory_space<vmem>>, vector<2x1024xf32>
    %5 = arith.subf %3, %4 : vector<2x1024xf32>
    %c0_4 = arith.constant 0 : index
    %c0_5 = arith.constant 0 : index
    %6 = vector.load %arg7[%c0_4, %c0_5] : memref<2x1xf32, #tpu.memory_space<vmem>>, vector<2x1xf32>
    %7 = arith.mulf %5, %5 : vector<2x1024xf32>
    %cst = arith.constant dense<0.000000e+00> : vector<2xf32>
    %8 = vector.multi_reduction <add>, %7, %cst [1] : vector<2x1024xf32> to vector<2xf32>
    %9 = vector.shape_cast %8 : vector<2xf32> to vector<2x1xf32>
    %10 = arith.addf %6, %9 : vector<2x1xf32>
    %c0_6 = arith.constant 0 : index
    %c0_7 = arith.constant 0 : index
    %11 = vector.load %arg7[%c0_6, %c0_7] : memref<2x1xf32, #tpu.memory_space<vmem>>, vector<2x1xf32>
    tpu.vector_store %arg7[%c0_6, %c0_7], %10 {strides = array<i32>} : memref<2x1xf32, #tpu.memory_space<vmem>>, vector<2x1xf32>,
    %c0_8 = arith.constant 0 : index
    %c0_9 = arith.constant 0 : index
    %12 = vector.load %arg8[%c0_8, %c0_9] : memref<2x1xf32, #tpu.memory_space<vmem>>, vector<2x1xf32>
    %13 = arith.mulf %4, %4 : vector<2x1024xf32>
    %cst_10 = arith.constant dense<0.000000e+00> : vector<2xf32>
    %14 = vector.multi_reduction <add>, %13, %cst_10 [1] : vector<2x1024xf32> to vector<2xf32>
    %15 = vector.shape_cast %14 : vector<2xf32> to vector<2x1xf32>
    %16 = arith.addf %12, %15 : vector<2x1xf32>
    %c0_11 = arith.constant 0 : index
    %c0_12 = arith.constant 0 : index
    %17 = vector.load %arg8[%c0_11, %c0_12] : memref<2x1xf32, #tpu.memory_space<vmem>>, vector<2x1xf32>
    tpu.vector_store %arg8[%c0_11, %c0_12], %16 {strides = array<i32>} : memref<2x1xf32, #tpu.memory_space<vmem>>, vector<2x1xf32>,
    %c0_i32_13 = arith.constant 0 : i32
    %18 = arith.cmpi eq, %arg2, %c0_i32_13 : i32
    %19 = arith.extui %18 : i1 to i32
    %c0_i32_14 = arith.constant 0 : i32
    %20 = arith.cmpi ne, %19, %c0_i32_14 : i32
    scf.if %20 {
      %c0_15 = arith.constant 0 : index
      %c0_16 = arith.constant 0 : index
      %21 = vector.load %arg7[%c0_15, %c0_16] : memref<2x1xf32, #tpu.memory_space<vmem>>, vector<2x1xf32>
      %c0_17 = arith.constant 0 : index
      %c0_18 = arith.constant 0 : index
      %c0_19 = arith.constant 0 : index
      %22 = vector.load %arg5[%c0_17, %c0_18, %c0_19] : memref<1x2x1xf32, #tpu.memory_space<vmem>>, vector<1x2x1xf32>
      %23 = vector.shape_cast %22 : vector<1x2x1xf32> to vector<2x1xf32>
      %24 = vector.shape_cast %21 : vector<2x1xf32> to vector<1x2x1xf32>
      tpu.vector_store %arg5[%c0_17, %c0_18, %c0_19], %24 {strides = array<i32>} : memref<1x2x1xf32, #tpu.memory_space<vmem>>, vector<1x2x1xf32>,
      %c0_20 = arith.constant 0 : index
      %c0_21 = arith.constant 0 : index
      %25 = vector.load %arg8[%c0_20, %c0_21] : memref<2x1xf32, #tpu.memory_space<vmem>>, vector<2x1xf32>
      %c0_22 = arith.constant 0 : index
      %c0_23 = arith.constant 0 : index
      %c0_24 = arith.constant 0 : index
      %26 = vector.load %arg6[%c0_22, %c0_23, %c0_24] : memref<1x2x1xf32, #tpu.memory_space<vmem>>, vector<1x2x1xf32>
      %27 = vector.shape_cast %26 : vector<1x2x1xf32> to vector<2x1xf32>
      %28 = vector.shape_cast %25 : vector<2x1xf32> to vector<1x2x1xf32>
      tpu.vector_store %arg6[%c0_22, %c0_23, %c0_24], %28 {strides = array<i32>} : memref<1x2x1xf32, #tpu.memory_space<vmem>>, vector<1x2x1xf32>,
    } else {
    }
    return
  }
  func.func @transform_0(%arg0: i32, %arg1: i32, %arg2: i32) -> (i32, i32) {
    %c1_i32 = arith.constant 1 : i32
    %0 = arith.muli %arg0, %c1_i32 : i32
    %1 = arith.addi %0, %arg2 : i32
    %c0_i32 = arith.constant 0 : i32
    return %arg1, %1 : i32, i32
  }
  func.func @transform_1(%arg0: i32, %arg1: i32, %arg2: i32) -> (i32, i32) {
    %c1_i32 = arith.constant 1 : i32
    %0 = arith.muli %arg0, %c1_i32 : i32
    %1 = arith.addi %0, %arg2 : i32
    %c0_i32 = arith.constant 0 : i32
    return %arg1, %1 : i32, i32
  }
  func.func @transform_2(%arg0: i32, %arg1: i32, %arg2: i32) -> (i32, i32, i32) {
    %c0_i32 = arith.constant 0 : i32
    %c0_i32_0 = arith.constant 0 : i32
    return %arg0, %arg1, %c0_i32 : i32, i32, i32
  }
  func.func @transform_3(%arg0: i32, %arg1: i32, %arg2: i32) -> (i32, i32, i32) {
    %c0_i32 = arith.constant 0 : i32
    %c0_i32_0 = arith.constant 0 : i32
    return %arg0, %arg1, %c0_i32 : i32, i32, i32
  }
}

</mosaic_0001>

<bundles_post_ra>
// kernel: tpu_custom_call.1
= control target key start
LH: loop header
LB: loop body
LE: loop exit
PB: predicated region body
PF: predicated region fallthrough
CT: control target
= control target key end

     0   :  { %9 = vsyncpa [#allocation5], 0  ;;  %s319_s0 = inlined_call_operand.hbm [shape: f32[2,1024], index: 0, kind: input, shape index: {}]   ;;  %s320_s1 = inlined_call_operand.hbm [shape: f32[2,1024], index: 1, kind: input, shape index: {}]   ;;  %s321_s2 = inlined_call_operand.vmem [shape: f32[1,2,1], index: 2, kind: output, shape index: {0}]   ;;  %s322_s3 = inlined_call_operand.vmem [shape: f32[1,2,1], index: 3, kind: output, shape index: {1}]  }
   0x1   :  { %10 = vsyncpa [#allocation7], 0  ;;  %s261_s12 = smov [#allocation4]   ;;  %s262_s14 = smov [#allocation6]  }
   0x2   :  { %s21_s13 = sshll.u32 %s261_s12, 4  ;;  %s35_s15 = sshll.u32 %s262_s14, 4  ;;  %s22_s13 = int_to_ptr.vmem [resolvable:$true] %s21_s13  ;;  %s36_s15 = int_to_ptr.vmem [resolvable:$true] %s35_s15 }
   0x3   :  { %s225_s16 = scalar_lea.vmem %s22_s13, 256  ;;  %p230_p1 = scmp.lt.s32.totalorder %s22_s13, %s22_s13 }
   0x4   :  { %p226_p0 = scmp.ne.s32.totalorder %s22_s13, %s225_s16  ;;  %p231_p2 = scmp.lt.s32.totalorder %s225_s16, %s225_s16 }
   0x6   :  { %p232_p3 = por %p231_p2, %p230_p1 }
   0x8   :  { %p233_p4 = pnand %p232_p3, %p226_p0 }
   0xa   :  { %236 = shalt.err (!%p233_p4)
}
   0xb   :  { %24 = dma.hbm_to_vmem [thread:$0]  %s319_s0, 256, %s22_s13, [#allocation5]  }
   0xc   :  { %s245_s19 = scalar_lea.vmem %s36_s15, 256  ;;  %p250_p6 = scmp.lt.s32.totalorder %s36_s15, %s36_s15 }
   0xd   :  { %p246_p5 = scmp.ne.s32.totalorder %s36_s15, %s245_s19  ;;  %p251_p7 = scmp.lt.s32.totalorder %s245_s19, %s245_s19 }
   0xf   :  { %p252_p8 = por %p251_p7, %p250_p6 }
  0x11   :  { %p253_p9 = pnand %p252_p8, %p246_p5 }
  0x13   :  { %256 = shalt.err (!%p253_p9)
}
  0x14   :  { %38 = dma.hbm_to_vmem [thread:$0]  %s320_s1, 256, %s36_s15, [#allocation7]  }
  0x15   :  { %257 = dma.done.wait [#allocation5], 256  }
  0x16   :  { %258 = vsyncadd [#allocation5], 4294967040 }
  0x17   :  { %259 = dma.done.wait [#allocation7], 256  }
  0x18   :  { %260 = vsyncadd [#allocation7], 4294967040  ;;  %v71_v0 = vlaneseq  ;;  %vm53_vm0 = vcmask 1024   ;;  %v263_v1 = vmov 1983009808   ;;  %v264_v3 = vmov 0.0  }
  0x19   :  { %v69_v2 = vunpack.c.l.s4 %v263_v1  ;;  %54 = vst.msk [vmem:[#allocation2] sm:$0x3] %vm53_vm0, %v264_v3  ;;  %55 = vst.msk [vmem:[#allocation3] sm:$0x3] %vm53_vm0, %v264_v3  ;;  %v56_v6 = vld [vmem:[#allocation4] sm:$0xff]  ;;  %v57_v7 = vld [vmem:[#allocation4 + $0x8] sm:$0xff] }
  0x1a   :  { %v72_v5 = vshrl.u32 %v71_v0, 7  ;;  %v58_v8 = vld [vmem:[#allocation6] sm:$0xff]  ;;  %v59_v9 = vld [vmem:[#allocation6 + $0x8] sm:$0xff]  ;;  %vm109_vm1 = vcmask 1041408  }
  0x1b   :  { %v70_v4 = vunpack.c.0.s8 %v69_v2  ;;  %v60_v10 = vsub.f32 %v56_v6, %v58_v8  ;;  %v131_v12 = vmul.f32 %v58_v8, %v58_v8  ;;  %v61_v13 = vsub.f32 %v57_v7, %v59_v9 }
  0x1c   :  { %v132_v18 = vmul.f32 %v59_v9, %v59_v9 }
  0x1d   :  { %v73_v11 = vsub.s32 %v70_v4, %v72_v5  ;;  %v63_v14 = vmul.f32 %v60_v10, %v60_v10  ;;  %v135_v15 = vcombine.high %v131_v12, %v131_v12  ;;  %v64_v17 = vmul.f32 %v61_v13, %v61_v13 }
  0x1e   :  { %v152_v29 = vcombine.high %v132_v18, %v132_v18 }
  0x1f   :  { %v142_v16 = vrot.slane %v131_v12, %v73_v11  ;;  %v67_v19 = vcombine.high %v63_v14, %v63_v14  ;;  %v74_v20 = vrot.slane %v63_v14, %v73_v11  ;;  %v149_v21 = vrot.slane %v135_v15, %v73_v11 }
  0x20   :  { %v84_v22 = vcombine.high %v64_v17, %v64_v17  ;;  %v91_v26 = vrot.slane %v64_v17, %v73_v11  ;;  %v159_v30 = vrot.slane %v132_v18, %v73_v11  ;;  %v166_v44 = vrot.slane %v152_v29, %v73_v11  ;;  %v62_v3 = vld [vmem:[#allocation2] sm:$0x3]  ;;  %v130_v6 = vld [vmem:[#allocation3] sm:$0x3] }
  0x21   :  { %v150_v23 = vcombine.high %v142_v16, %v142_v16  ;;  %v81_v24 = vrot.slane %v67_v19, %v73_v11  ;;  %v82_v25 = vcombine.high %v74_v20, %v74_v20  ;;  %v110_v27 = vsel %vm109_vm1, %v74_v20, 0.0 }
  0x22   :  { %v151_v28 = vcombine.high %v149_v21, %v149_v21  ;;  %v177_v34 = vsel %vm109_vm1, %v142_v16, 0.0  ;;  %v98_v35 = vrot.slane %v84_v22, %v73_v11  ;;  %v99_v37 = vcombine.high %v91_v26, %v91_v26 }
  0x23   :  { %v83_v31 = vcombine.high %v81_v24, %v81_v24  ;;  %v111_v32 = vsel %vm109_vm1, %v82_v25, 0.0  ;;  %v113_v33 = vsel %vm109_vm1, %v81_v24, 0.0  ;;  %v178_v39 = vsel %vm109_vm1, %v150_v23, 0.0 }
  0x24   :  { %v112_v36 = vadd.f32 %v111_v32, %v110_v27  ;;  %v180_v40 = vsel %vm109_vm1, %v149_v21, 0.0  ;;  %v179_v42 = vadd.f32 %v178_v39, %v177_v34  ;;  %v117_v43 = vsel %vm109_vm1, %v91_v26, 0.0 }
  0x25   :  { %v115_v38 = vsel %vm109_vm1, %v83_v31, 0.0  ;;  %v167_v45 = vcombine.high %v159_v30, %v159_v30  ;;  %v182_v46 = vsel %vm109_vm1, %v151_v28, 0.0  ;;  %v100_v49 = vcombine.high %v98_v35, %v98_v35 }
  0x26   :  { %v114_v41 = vadd.f32 %v113_v33, %v112_v36  ;;  %v181_v48 = vadd.f32 %v180_v40, %v179_v42  ;;  %v119_v50 = vsel %vm109_vm1, %v99_v37, 0.0  ;;  %v184_v51 = vsel %vm109_vm1, %v159_v30, 0.0 }
  0x27   :  { %v121_v54 = vsel %vm109_vm1, %v98_v35, 0.0  ;;  %v168_v55 = vcombine.high %v166_v44, %v166_v44  ;;  %v186_v56 = vsel %vm109_vm1, %v167_v45, 0.0  ;;  %v123_v59 = vsel %vm109_vm1, %v100_v49, 0.0 }
  0x28   :  { %v116_v47 = vadd.f32 %v115_v38, %v114_v41  ;;  %v183_v53 = vadd.f32 %v182_v46, %v181_v48  ;;  %v188_v60 = vsel %vm109_vm1, %v166_v44, 0.0 }
  0x29   :  { %v190_v63 = vsel %vm109_vm1, %v168_v55, 0.0 }
  0x2a   :  { %v118_v52 = vadd.f32 %v117_v43, %v116_v47  ;;  %v185_v58 = vadd.f32 %v184_v51, %v183_v53 }
  0x2c   :  { %v120_v57 = vadd.f32 %v119_v50, %v118_v52  ;;  %v187_v62 = vadd.f32 %v186_v56, %v185_v58 }
  0x2e   :  { %v122_v61 = vadd.f32 %v121_v54, %v120_v57  ;;  %v189_v1 = vadd.f32 %v188_v60, %v187_v62 }
  0x30   :  { %v124_v0 = vadd.f32 %v123_v59, %v122_v61  ;;  %v191_v2 = vadd.f32 %v190_v63, %v189_v1 }
  0x32   :  { %125 = vadd.xlane.f32.xlu0 %v124_v0 }
  0x36   :  { %192 = vadd.xlane.f32.xlu0 %v191_v2 }
  0xbb   :  { %v126_v4 = vpop.xlane.xlu0 %125 }
  0xbc   :  { %v127_v5 = vadd.f32 %v126_v4, %v62_v3 }
  0xbe   :  { %129 = vst.msk [vmem:[#allocation2] sm:$0x3] %vm53_vm0, %v127_v5 }
  0xbf   :  { %v193_v7 = vpop.xlane.xlu0 %192 }
  0xc0   :  { %v194_v8 = vadd.f32 %v193_v7, %v130_v6 }
  0xc2   :  { %195 = vst.msk [vmem:[#allocation3] sm:$0x3] %vm53_vm0, %v194_v8 }
  0xc5   :  { %v199_v9 = vld [vmem:[#allocation2] sm:$0x3] }
  0xc6   :  { %200 = vst.msk [vmem:[%s321_s2] sm:$0x3] %vm53_vm0, %v199_v9 }
  0xc9   :  { %v201_v10 = vld [vmem:[#allocation3] sm:$0x3] }
  0xca   :  { %202 = vst.msk [vmem:[%s322_s3] sm:$0x3] %vm53_vm0, %v201_v10 }
  0xcb   :  { %211 = vsyncpa [#allocation5], 1 }
  0xcc   :  { %212 = vsyncpa [#allocation7], 1 }

</bundles_post_ra>
